<compile_context>
chip_gen: v7x
topology: tpu7x:2x2x1
jax: 0.10.0
libtpu: 0.0.40
codegen_flags: <defaults>
</compile_context>

<pallas_src>
import jax
import jax.numpy as jnp
from jax.experimental import pallas as pl
from jax.experimental.pallas import tpu as pltpu


def _round_up(x, m):
    return ((x + m - 1) // m) * m


def _pick_row_tile(m, cap):
    """Largest multiple-of-8 divisor of m that is <= cap; else m (full block).

    Guarantees: tile divides m exactly (no pad / tail slice) and the block's
    second-minor dim is either a multiple of 8 or the full array extent.
    """
    t = min(cap, m)
    t -= t % 8
    while t >= 8:
        if m % t == 0:
            return t
        t -= 8
    return m


def _pick_k_tile(k, cap=1024):
    """Largest multiple-of-128 divisor of k <= cap (and <= k//2 when possible,
    so the head gets >= 2 pipelined K steps); else k (single step)."""
    if k % 128 != 0:
        return k
    cap_eff = max(128, min(cap, k // 2 if k >= 256 else k))
    t = (cap_eff // 128) * 128
    while t >= 128:
        if k % t == 0:
            return t
        t -= 128
    return k


# ---------------------------------------------------------------------------
# Pallas kernel: conv-as-matmul.  bf16 MXU matmul (f32 accumulation) ->
# f32 bias -> ReLU -> bf16 store.
# ---------------------------------------------------------------------------
def _conv_mm_kernel(x_ref, w_ref, b_ref, o_ref):
    y = jnp.dot(x_ref[...], w_ref[...], preferred_element_type=jnp.float32)
    y = jnp.maximum(y + b_ref[...], 0.0)
    o_ref[...] = y.astype(o_ref.dtype)


def conv_matmul(patches, w, b, *, tm_cap=2048):
    """relu(patches @ w + b) -> bf16.  patches:(M,KKC) bf16, w:(KKC,Cout) bf16."""
    M, K = patches.shape
    K2, N = w.shape
    assert K == K2, (K, K2)
    tm = _pick_row_tile(M, tm_cap)     # exact divisor of M: no pad, no tail slice
    return pl.pallas_call(
        _conv_mm_kernel,
        out_shape=jax.ShapeDtypeStruct((M, N), jnp.bfloat16),
        grid=(M // tm,),
        in_specs=[
            pl.BlockSpec((tm, K), lambda i: (i, 0)),
            # Grid-invariant weight/bias blocks (index_map -> (0,0)); expected
            # to be fetched once and kept resident across the row tiles.
            pl.BlockSpec((K, N), lambda i: (0, 0)),
            pl.BlockSpec((1, N), lambda i: (0, 0)),
        ],
        out_specs=pl.BlockSpec((tm, N), lambda i: (i, 0)),
        compiler_params=pltpu.CompilerParams(
            dimension_semantics=("parallel",),
            vmem_limit_bytes=32 * 1024 * 1024),
    )(patches, w, b.reshape(1, N))


# ---------------------------------------------------------------------------
# Pallas kernel: fused MLP head (FC1 + ReLU + FC2) with a K-streaming grid
# axis.  FC1 accumulates into a VMEM f32 scratch; the hidden activation never
# leaves VMEM; the output store is a lane-dense (>=128-wide) slab.
# ---------------------------------------------------------------------------
def _fc_head_kernel(x_ref, w1_ref, b1_ref, w2_ref, b2_ref, o_ref, acc_ref):
    k = pl.program_id(1)

    @pl.when(k == 0)
    def _():
        acc_ref[...] = jnp.zeros_like(acc_ref)

    acc_ref[...] += jnp.dot(x_ref[...].astype(jnp.bfloat16), w1_ref[...],
                            preferred_element_type=jnp.float32)

    @pl.when(k == pl.num_programs(1) - 1)
    def _():
        h = jnp.maximum(acc_ref[...] + b1_ref[...], 0.0)
        q = jnp.dot(h.astype(jnp.bfloat16), w2_ref[...],
                    preferred_element_type=jnp.float32)
        o_ref[...] = (q + b2_ref[...]).astype(o_ref.dtype)


def fc_head(x, w1, b1, w2, b2, *, tm_cap=512, tk_cap=1024):
    """q_slab = relu(x @ w1 + b1) @ w2 + b2.  Output is (M, Npad) f32.

    Grid = (M tiles ["parallel"], K tiles ["arbitrary"]).  Keeping a single M
    tile at small inference batches avoids re-reading w1 per row tile (the head
    is weight-DMA bound); at larger batches M splits naturally and both v7x
    TensorCores get work.
    """
    M, K = x.shape
    K1, F = w1.shape
    F2, Np = w2.shape
    assert K == K1 and F == F2, (K, K1, F, F2)
    tm = _pick_row_tile(M, tm_cap)     # exact divisor of M
    tk = _pick_k_tile(K, tk_cap)       # exact divisor of K, multiple of 128 (or K)
    return pl.pallas_call(
        _fc_head_kernel,
        out_shape=jax.ShapeDtypeStruct((M, Np), jnp.float32),
        grid=(M // tm, K // tk),
        in_specs=[
            pl.BlockSpec((tm, tk), lambda i, k: (i, k)),
            pl.BlockSpec((tk, F), lambda i, k: (k, 0)),   # streamed along K
            pl.BlockSpec((1, F), lambda i, k: (0, 0)),    # invariant
            pl.BlockSpec((F, Np), lambda i, k: (0, 0)),   # invariant
            pl.BlockSpec((1, Np), lambda i, k: (0, 0)),   # invariant
        ],
        out_specs=pl.BlockSpec((tm, Np), lambda i, k: (i, 0)),
        scratch_shapes=[pltpu.VMEM((tm, F), jnp.float32)],
        compiler_params=pltpu.CompilerParams(
            dimension_semantics=("parallel", "arbitrary"),
            vmem_limit_bytes=32 * 1024 * 1024),
    )(x, w1, b1.reshape(1, F), w2, b2.reshape(1, Np))


# ---------------------------------------------------------------------------
# Glue: im2col patch extraction (data movement only, bf16 patches).
# ---------------------------------------------------------------------------
def _im2col(x, K, S, P):
    """x: (N, H, W, C) -> (N*OH*OW, K*K*C) with feature order (ky, kx, c)."""
    if P:
        x = jnp.pad(x, ((0, 0), (P, P), (P, P), (0, 0)))
    n, H, W, C = x.shape
    OH = (H - K) // S + 1
    OW = (W - K) // S + 1
    cols = []
    for ky in range(K):
        for kx in range(K):
            cols.append(x[:, ky:ky + S * OH:S, kx:kx + S * OW:S, :])
    patches = jnp.stack(cols, axis=3)          # (n, OH, OW, K*K, C)
    return patches.reshape(n * OH * OW, K * K * C), OH, OW


# ---------------------------------------------------------------------------
# Parameter init (deterministic, PyTorch weight layouts).
# ---------------------------------------------------------------------------
def init_params(key, image_shape, output_size, fc_sizes=512,
                channels=(32, 64, 64), kernel_sizes=(8, 4, 3),
                strides=(4, 2, 1), paddings=(0, 1, 1)):
    h, w, c = image_shape
    keys = jax.random.split(key, 2 * len(channels) + 4)
    params = {"conv": [], "fc": []}
    in_c, hh, ww, ki = c, h, w, 0
    for out_c, K, S, P in zip(channels, kernel_sizes, strides, paddings):
        wconv = 0.05 * jax.random.normal(keys[ki], (out_c, in_c, K, K),
                                         jnp.float32); ki += 1
        bconv = 0.05 * jax.random.normal(keys[ki], (out_c,), jnp.float32); ki += 1
        params["conv"].append((wconv, bconv, K, S, P))
        hh = (hh + 2 * P - K) // S + 1
        ww = (ww + 2 * P - K) // S + 1
        in_c = out_c
    conv_out_size = in_c * hh * ww
    w1 = 0.05 * jax.random.normal(keys[ki], (fc_sizes, conv_out_size),
                                  jnp.float32); ki += 1
    b1 = 0.05 * jax.random.normal(keys[ki], (fc_sizes,), jnp.float32); ki += 1
    w2 = 0.05 * jax.random.normal(keys[ki], (output_size, fc_sizes),
                                  jnp.float32); ki += 1
    b2 = 0.05 * jax.random.normal(keys[ki], (output_size,), jnp.float32); ki += 1
    params["fc"] = [(w1, b1), (w2, b2)]
    return params


# ---------------------------------------------------------------------------
# One-time weight preparation (all layout work hoisted out of the forward).
# ---------------------------------------------------------------------------
def prepare_params(params, image_shape, output_size):
    h, w, c = image_shape
    prepared = {"conv": [], "head": None}
    in_c, hh, ww = c, h, w
    for li, (wc, bc, K, S, P) in enumerate(params["conv"]):
        out_c, in_c_w = wc.shape[0], wc.shape[1]
        # PyTorch (Cout, Cin, K, K) -> matmul weight, rows in (ky, kx, c) order.
        wmat = jnp.transpose(wc, (2, 3, 1, 0)).reshape(K * K * in_c_w, out_c)
        if li == 0:
            wmat = wmat * (1.0 / 255.0)   # fold image scaling into conv1 weights
        prepared["conv"].append(
            (wmat.astype(jnp.bfloat16), bc.astype(jnp.float32), K, S, P))
        hh = (hh + 2 * P - K) // S + 1
        ww = (ww + 2 * P - K) // S + 1
        in_c = out_c

    (w1, b1), (w2, b2) = params["fc"]
    fc_sizes = w1.shape[0]
    # Permute FC1 input rows from PyTorch NCHW-flatten (c,h,w) order to the
    # NHWC-flatten (h,w,c) order of our feature map -> deletes runtime transpose.
    w1_mat = jnp.transpose(w1.reshape(fc_sizes, in_c, hh, ww), (2, 3, 1, 0))
    w1_mat = w1_mat.reshape(hh * ww * in_c, fc_sizes).astype(jnp.bfloat16)
    n_pad = _round_up(output_size, 128)   # lane-dense output slab
    w2_mat = jnp.zeros((fc_sizes, n_pad), jnp.float32).at[:, :output_size].set(w2.T)
    b2_pad = jnp.zeros((n_pad,), jnp.float32).at[:output_size].set(b2)
    prepared["head"] = (w1_mat, b1.astype(jnp.float32),
                        w2_mat.astype(jnp.bfloat16), b2_pad, output_size)
    return prepared


# ---------------------------------------------------------------------------
# Forward pass (matches AtariDqnModel.forward, dueling=False, use_maxpool=False)
# ---------------------------------------------------------------------------
def atari_dqn_forward(prepared, observation, prev_action=None, prev_reward=None):
    # prev_action / prev_reward are accepted but unused, as in the PyTorch module.
    assert observation.ndim in (3, 4, 5)
    img_shape = observation.shape[-3:]
    lead_shape = observation.shape[:-3]
    # Raw pixels are exact in bf16; the 1/255 scale is folded into conv1 weights.
    x = observation.reshape((-1,) + img_shape).astype(jnp.bfloat16)
    n = x.shape[0]

    for (wmat, bc, K, S, P) in prepared["conv"]:
        patches, OH, OW = _im2col(x, K, S, P)
        y = conv_matmul(patches, wmat, bc)
        x = y.reshape(n, OH, OW, wmat.shape[1])   # free: same HBM layout

    feat = x.reshape(n, -1)   # NHWC flatten; FC1 rows were permuted to match.
    w1_mat, b1, w2_mat, b2_pad, out_size = prepared["head"]
    q = fc_head(feat, w1_mat, b1, w2_mat, b2_pad)
    return q[:, :out_size].reshape(lead_shape + (out_size,))   # f32


# ---------------------------------------------------------------------------
# Pure-JAX (XLA) reference for numerical sanity checking.
# ---------------------------------------------------------------------------
def reference_forward(params, obs):
    x = obs.astype(jnp.float32) * (1.0 / 255.0)          # (B, H, W, C)
    for (wc, bc, K, S, P) in params["conv"]:
        w_hwio = jnp.transpose(wc, (2, 3, 1, 0))         # (K, K, Cin, Cout)
        x = jax.lax.conv_general_dilated(
            x, w_hwio, window_strides=(S, S), padding=[(P, P), (P, P)],
            dimension_numbers=("NHWC", "HWIO", "NHWC"))
        x = jax.nn.relu(x + bc)
    # PyTorch flattens NCHW order.
    feat = jnp.transpose(x, (0, 3, 1, 2)).reshape(x.shape[0], -1)
    (w1, b1), (w2, b2) = params["fc"]
    h = jax.nn.relu(feat @ w1.T + b1)
    return h @ w2.T + b2


if __name__ == "__main__":
    key = jax.random.PRNGKey(0)
    kp, ko = jax.random.split(key)

    # Small shapes consistent with the module's conv chain (8/4/0, 4/2/1, 3/1/1):
    # 20 -> 4 -> 2 -> 2 spatial, conv_out_size = 64*2*2 = 256 (so the head runs
    # 2 pipelined K steps with tk=128).
    B, H, W, C = 2, 20, 20, 4
    output_size = 6
    fc_sizes = 128

    params = init_params(kp, (H, W, C), output_size, fc_sizes=fc_sizes)
    prepared = prepare_params(params, (H, W, C), output_size)
    obs = jax.random.randint(ko, (B, H, W, C), 0, 256, dtype=jnp.int32).astype(
        jnp.uint8)
    prev_action = jnp.zeros((B,), jnp.int32)
    prev_reward = jnp.zeros((B,), jnp.float32)

    q = atari_dqn_forward(prepared, obs, prev_action, prev_reward)
    q = jax.block_until_ready(q)
    assert q.shape == (B, output_size) and q.dtype == jnp.float32

    # Loose-tolerance check vs f32 XLA reference (kernel uses bf16 weights and
    # bf16 intermediate activations).
    q_ref = jax.block_until_ready(reference_forward(params, obs))
    max_err = float(jnp.max(jnp.abs(q - q_ref)))
    assert max_err < 0.15, f"max abs error vs reference: {max_err}"
    print("KERNEL_OK")
</pallas_src>

<mosaic_0001>
module attributes {stable_mosaic.version = 11 : i64} {
  func.func @_conv_mm_kernel(%arg0: i32, %arg1: memref<32x256xbf16, #tpu.memory_space<vmem>>, %arg2: memref<256x32xbf16, #tpu.memory_space<vmem>>, %arg3: memref<1x32xf32, #tpu.memory_space<vmem>>, %arg4: memref<32x32xbf16, #tpu.memory_space<vmem>>) attributes {dimension_semantics = [#tpu.dimension_semantics<parallel>], iteration_bounds = array<i64: 1>, scalar_prefetch = 0 : i64, scratch_operands = 0 : i64, tpu.core_type = #tpu.core_type<tc>, window_params = [{transform_indices = @transform_0, window_bounds = array<i64: 32, 256>}, {pipeline_mode = #tpu.pipeline_mode<synchronous>, transform_indices = @transform_1, window_bounds = array<i64: 256, 32>}, {pipeline_mode = #tpu.pipeline_mode<synchronous>, transform_indices = @transform_2, window_bounds = array<i64: 1, 32>}, {transform_indices = @transform_3, window_bounds = array<i64: 32, 32>}]} {
    %c0 = arith.constant 0 : index
    %c0_0 = arith.constant 0 : index
    %0 = vector.load %arg1[%c0, %c0_0] : memref<32x256xbf16, #tpu.memory_space<vmem>>, vector<32x256xbf16>
    %c0_1 = arith.constant 0 : index
    %c0_2 = arith.constant 0 : index
    %1 = vector.load %arg2[%c0_1, %c0_2] : memref<256x32xbf16, #tpu.memory_space<vmem>>, vector<256x32xbf16>
    %cst = arith.constant dense<0.000000e+00> : vector<32x32xf32>
    %2 = tpu.matmul %0, %1, %cst {dimension_numbers = #tpu.dot_dimension_numbers<[1], [0], [0], [1], [0, 0, 1, 1], [], []>} : vector<32x256xbf16>, vector<256x32xbf16>, vector<32x32xf32> -> vector<32x32xf32>
    %c0_3 = arith.constant 0 : index
    %c0_4 = arith.constant 0 : index
    %3 = vector.load %arg3[%c0_3, %c0_4] : memref<1x32xf32, #tpu.memory_space<vmem>>, vector<1x32xf32>
    %4 = vector.broadcast %3 : vector<1x32xf32> to vector<32x32xf32>
    %5 = arith.addf %2, %4 : vector<32x32xf32>
    %cst_5 = arith.constant 0.000000e+00 : f32
    %6 = vector.broadcast %cst_5 : f32 to vector<32x32xf32>
    %7 = arith.maximumf %5, %6 : vector<32x32xf32>
    %8 = arith.truncf %7 : vector<32x32xf32> to vector<32x32xbf16>
    %c0_6 = arith.constant 0 : index
    %c0_7 = arith.constant 0 : index
    %9 = vector.load %arg4[%c0_6, %c0_7] : memref<32x32xbf16, #tpu.memory_space<vmem>>, vector<32x32xbf16>
    tpu.vector_store %arg4[%c0_6, %c0_7], %8 {strides = array<i32>} : memref<32x32xbf16, #tpu.memory_space<vmem>>, vector<32x32xbf16>,
    return
  }
  func.func @transform_0(%arg0: i32) -> (i32, i32) {
    %c0_i32 = arith.constant 0 : i32
    %c0_i32_0 = arith.constant 0 : i32
    return %arg0, %c0_i32 : i32, i32
  }
  func.func @transform_1(%arg0: i32) -> (i32, i32) {
    %c0_i32 = arith.constant 0 : i32
    %c0_i32_0 = arith.constant 0 : i32
    %c0_i32_1 = arith.constant 0 : i32
    return %c0_i32, %c0_i32_0 : i32, i32
  }
  func.func @transform_2(%arg0: i32) -> (i32, i32) {
    %c0_i32 = arith.constant 0 : i32
    %c0_i32_0 = arith.constant 0 : i32
    %c0_i32_1 = arith.constant 0 : i32
    return %c0_i32, %c0_i32_0 : i32, i32
  }
  func.func @transform_3(%arg0: i32) -> (i32, i32) {
    %c0_i32 = arith.constant 0 : i32
    %c0_i32_0 = arith.constant 0 : i32
    return %arg0, %c0_i32 : i32, i32
  }
}

</mosaic_0001>

<bundles_post_ra>
// kernel: tpu_custom_call.1
= control target key start
LH: loop header
LB: loop body
LE: loop exit
PB: predicated region body
PF: predicated region fallthrough
CT: control target
= control target key end

     0   :  { %s485_s0 = inlined_call_operand.vmem [shape: bf16[32,256], index: 0, kind: input, shape index: {}]   ;;  %s486_s1 = inlined_call_operand.vmem [shape: bf16[256,32], index: 1, kind: input, shape index: {}]   ;;  %s487_s2 = inlined_call_operand.vmem [shape: f32[1,32], index: 2, kind: input, shape index: {}]   ;;  %s488_s3 = inlined_call_operand.hbm [shape: bf16[32,32], index: 3, kind: output, shape index: {}]  }
   0x1   :  { %v341_v0 = vld [vmem:[%s486_s1 + $0x40] sm:$0xff]   ;;  %v343_v2 = vld [vmem:[%s486_s1 + $0x48] sm:$0xff]   ;;  %v345_v4 = vld [vmem:[%s486_s1 + $0x50] sm:$0xff]  }
   0x2   :  { %v342_v1 = vld [vmem:[%s486_s1] sm:$0xff]   ;;  %294 = vmatprep.subr.bf16.mxu0 %v341_v0  ;;  %322 = vmatprep.subr.bf16.mxu1 %v341_v0  ;;  %v344_v3 = vld [vmem:[%s486_s1 + $0x8] sm:$0xff]   ;;  %v346_v5 = vld [vmem:[%s486_s1 + $0x10] sm:$0xff]  }
   0x3   :  { %295 = vmatpush3.bf16.msra.mxu0 %v342_v1  ;;  %330 = vmatpush3.bf16.msra.mxu1 %v342_v1  ;;  %v347_v6 = vld [vmem:[%s486_s1 + $0x58] sm:$0xff]   ;;  %v349_v8 = vld [vmem:[%s486_s1 + $0x60] sm:$0xff]   ;;  %v351_v10 = vld [vmem:[%s486_s1 + $0x68] sm:$0xff]  }
   0x4   :  { %296 = vmatprep.subr.bf16.mxu0 %v343_v2  ;;  %323 = vmatprep.subr.bf16.mxu1 %v343_v2  ;;  %v348_v7 = vld [vmem:[%s486_s1 + $0x18] sm:$0xff]   ;;  %v350_v9 = vld [vmem:[%s486_s1 + $0x20] sm:$0xff]  }
   0x5   :  { %v359_v11 = vld [vmem:[%s485_s0 + $0x4] ss:$8 sps:$4 sm:$0xff]   ;;  %v362_v12 = vld [vmem:[%s485_s0 + $0x14] ss:$8 sps:$4 sm:$0xff]  }
   0x7   :  { %297 = vmatpush3.bf16.msra.mxu0 %v344_v3  ;;  %331 = vmatpush3.bf16.msra.mxu1 %v344_v3 }
   0x8   :  { %298 = vmatprep.subr.bf16.mxu0 %v345_v4  ;;  %324 = vmatprep.subr.bf16.mxu1 %v345_v4 }
   0xb   :  { %299 = vmatpush3.bf16.msra.mxu0 %v346_v5  ;;  %332 = vmatpush3.bf16.msra.mxu1 %v346_v5 }
   0xc   :  { %300 = vmatprep.subr.bf16.mxu0 %v347_v6  ;;  %325 = vmatprep.subr.bf16.mxu1 %v347_v6 }
   0xf   :  { %301 = vmatpush3.bf16.msra.mxu0 %v348_v7  ;;  %333 = vmatpush3.bf16.msra.mxu1 %v348_v7 }
  0x10   :  { %302 = vmatprep.subr.bf16.mxu0 %v349_v8  ;;  %326 = vmatprep.subr.bf16.mxu1 %v349_v8 }
  0x11   :  { %8 = vsyncpa [#allocation3], 0  ;;  %v352_v13 = vld [vmem:[%s486_s1 + $0x28] sm:$0xff]   ;;  %v353_v14 = vld [vmem:[%s486_s1 + $0x70] sm:$0xff]   ;;  %207 = vmatprep.mubr.bf16.mxu0 %v359_v11  ;;  %215 = vmatprep.mubr.bf16.mxu1 %v362_v12  ;;  %vm244_vm0 = vcmask 257024  }
  0x12   :  { %v354_v15 = vld [vmem:[%s486_s1 + $0x30] sm:$0xff]   ;;  %v355_v16 = vld [vmem:[%s486_s1 + $0x78] sm:$0xff]   ;;  %v357_v18 = vld [vmem:[%s485_s0] ss:$8 sps:$4 sm:$0xff]  }
  0x13   :  { %303 = vmatpush3.bf16.msra.mxu0 %v350_v9  ;;  %334 = vmatpush3.bf16.msra.mxu1 %v350_v9  ;;  %v356_v17 = vld [vmem:[%s486_s1 + $0x38] sm:$0xff]   ;;  %v265_v22 = vld [vmem:[%s487_s2] ss:$0 sm:$0xff] }
  0x14   :  { %304 = vmatprep.subr.bf16.mxu0 %v351_v10  ;;  %327 = vmatprep.subr.bf16.mxu1 %v351_v10  ;;  %v360_v19 = vld [vmem:[%s485_s0 + $0x10] ss:$8 sps:$4 sm:$0xff]   ;;  %s387_s0 = smov [#allocation2]  }
  0x15   :  { %s254_s1 = sshll.u32 %s387_s0, 4  ;;  %s255_s1 = int_to_ptr.vmem [resolvable:$true] %s254_s1 }
  0x16   :  { %s363_s2 = scalar_lea.vmem %s255_s1, 256  ;;  %p368_p1 = scmp.lt.s32.totalorder %s255_s1, %s255_s1 }
  0x17   :  { %305 = vmatpush3.bf16.msra.mxu0 %v352_v13  ;;  %335 = vmatpush3.bf16.msra.mxu1 %v352_v13  ;;  %p364_p0 = scmp.ne.s32.totalorder %s255_s1, %s363_s2  ;;  %p369_p2 = scmp.lt.s32.totalorder %s363_s2, %s363_s2 }
  0x18   :  { %306 = vmatprep.subr.bf16.mxu0 %v353_v14  ;;  %328 = vmatprep.subr.bf16.mxu1 %v353_v14 }
  0x19   :  { %p370_p3 = por %p369_p2, %p368_p1 }
  0x1b   :  { %307 = vmatpush3.bf16.msra.mxu0 %v354_v15  ;;  %336 = vmatpush3.bf16.msra.mxu1 %v354_v15  ;;  %p371_p4 = pnand %p370_p3, %p364_p0 }
  0x1c   :  { %308 = vmatprep.subr.bf16.mxu0 %v355_v16  ;;  %329 = vmatprep.subr.bf16.mxu1 %v355_v16 }
  0x1f   :  { %309 = vmatpush3.bf16.msra.mxu0 %v356_v17  ;;  %337 = vmatpush3.bf16.msra.mxu1 %v356_v17 }
  0x22   :  { %208 = vmatmul.mubr.bf16.vlgmr.msra.gmra.mrb[0].mxu0 %v357_v18  ;;  %216 = vmatmul.mubr.bf16.vlgmr.msra.gmra.mrb[0].mxu1 %v360_v19 }
  0xf5   :  { %v310_v20 = vpop.f32.mrb[0].mxu0  ;;  %v316_v21 = vpop.f32.mrb[0].mxu1 }
  0xf6   :  { %v311_v23 = vpop.f32.mrb[1].mxu0  ;;  %v317_v24 = vpop.f32.mrb[1].mxu1 }
  0xf7   :  { %v312_v25 = vadd.f32 %v311_v23, %v310_v20  ;;  %v318_v26 = vadd.f32 %v317_v24, %v316_v21  ;;  %v313_v27 = vpop.f32.mrb[2].mxu0  ;;  %v319_v28 = vpop.f32.mrb[2].mxu1 }
  0xf8   :  { %v314_v29 = vpop.f32.mrb[3].mxu0  ;;  %v320_v30 = vpop.f32.mrb[3].mxu1 }
  0xf9   :  { %v210_v31 = vadd.f32 %v312_v25, %v265_v22  ;;  %v218_v32 = vadd.f32 %v318_v26, %v265_v22  ;;  %v315_v33 = vadd.f32 %v314_v29, %v313_v27  ;;  %v321_v34 = vadd.f32 %v320_v30, %v319_v28 }
  0xfb   :  { %v224_v35 = vmax.f32 %v210_v31, 0.0  ;;  %v226_v36 = vmax.f32 %v218_v32, 0.0  ;;  %v213_v37 = vadd.f32 %v315_v33, %v265_v22  ;;  %v221_v38 = vadd.f32 %v321_v34, %v265_v22 }
  0xfd   :  { %v290_v39 = vpack.c.bf16 %v224_v35, %v224_v35  ;;  %v292_v40 = vpack.c.bf16 %v226_v36, %v226_v36  ;;  %v225_v41 = vmax.f32 %v213_v37, 0.0  ;;  %v227_v42 = vmax.f32 %v221_v38, 0.0 }
  0xff   :  { %245 = vst.msk [vmem:[#allocation2] sm:$0xf] %vm244_vm0, %v290_v39  ;;  %247 = vst.msk [vmem:[#allocation2 + $0x8] sm:$0xf] %vm244_vm0, %v292_v40  ;;  %v291_v43 = vpack.c.bf16 %v225_v41, %v225_v41  ;;  %v293_v44 = vpack.c.bf16 %v227_v42, %v227_v42 }
 0x101   :  { %246 = vst.msk [vmem:[#allocation2 + $0x4] sm:$0xf] %vm244_vm0, %v291_v43  ;;  %248 = vst.msk [vmem:[#allocation2 + $0xc] sm:$0xf] %vm244_vm0, %v293_v44 }
 0x102   :  { %374 = shalt.err (!%p371_p4)
}
 0x103   :  { %s375_s29 = scalar_lea.hbm %s488_s3, 256 }
 0x104   :  { %p376_p5 = scmp.ne.s32.totalorder %s488_s3, %s375_s29  ;;  %p379_p6 = scmp.lt.u32.totalorder %s375_s29, %s488_s3 }
 0x106   :  { %p381_p7 = pnand %p379_p6, %p376_p5 }
 0x108   :  { %384 = shalt.err (!%p381_p7)
}
 0x109   :  { %s388_s7 = smov 64   ;;  %s389_s8 = smov 4  }
 0x10a   :  { %260 = dma.vmem_to_hbm [thread:$0]  %s255_s1, 256, %s488_s3, [#allocation3], %s388_s7, %s388_s7, %s389_s8  }
 0x10b   :  { %385 = dma.done.wait [#allocation3], 256  }
 0x10c   :  { %386 = vsyncadd [#allocation3], 4294967040 }
 0x10d   :  { %264 = vsyncpa [#allocation3], 1 }

</bundles_post_ra>
